<compile_context>
chip_gen: v5e
topology: v5e:2x2
jax: 0.10.0
libtpu: 0.0.40
codegen_flags: <defaults>
</compile_context>

<pallas_src>
import jax
import jax.numpy as jnp
from jax.experimental import pallas as pl
from jax.experimental.pallas import tpu as pltpu

EPS = 1e-5
NEG_SLOPE = 0.01  # nn.LeakyReLU default


def _round_up(x, m):
    return (x + m - 1) // m * m


def _vmem_budget_bytes():
    # ~3/4 of per-core VMEM: 48 MiB on v7x (64 MiB), 96 MiB on v5e/v6e (128 MiB).
    try:
        cap = pltpu.get_tpu_info().vmem_capacity_bytes
    except Exception:
        cap = 64 << 20  # conservative fallback (v7x-sized)
    return min(cap * 3 // 4, 96 << 20)


def _conv_stats_kernel(patches_ref, w_ref, conv_ref, sum_ref, sumsq_ref):
    """Pass 1: conv-as-matmul + per-channel sum / sum-of-squares accumulation."""
    @pl.when(pl.program_id(0) == 0)
    def _():
        sum_ref[...] = jnp.zeros_like(sum_ref)
        sumsq_ref[...] = jnp.zeros_like(sumsq_ref)

    conv = jnp.dot(patches_ref[...], w_ref[...], preferred_element_type=jnp.float32)
    conv_ref[...] = conv
    sum_ref[...] += jnp.sum(conv, axis=0, keepdims=True)
    sumsq_ref[...] += jnp.sum(conv * conv, axis=0, keepdims=True)


def _bn_lrelu_kernel(conv_ref, scale_ref, shift_ref, o_ref):
    """Pass 2: folded batch-norm (one FMA per element) + LeakyReLU."""
    y = conv_ref[...] * scale_ref[...] + shift_ref[...]
    o_ref[...] = jnp.where(y > 0, y, NEG_SLOPE * y).astype(o_ref.dtype)


def _im2col_nhwc(x, ksize=3, stride=2):
    """x: (N, C, H, W) -> patches (M, K) with K ordered (kh, kw, c)."""
    # TODO(synk): build patch tiles inside the kernel from strided NHWC loads to avoid the
    #             9x im2col materialization in HBM.
    N, C, H, W = x.shape
    Ho = (H - ksize) // stride + 1
    Wo = (W - ksize) // stride + 1
    xh = x.transpose(0, 2, 3, 1)  # single NCHW -> NHWC transpose
    cols = [xh[:, kh:kh + stride * Ho:stride, kw:kw + stride * Wo:stride, :]
            for kh in range(ksize) for kw in range(ksize)]
    patches = jnp.concatenate(cols, axis=-1).reshape(N * Ho * Wo, ksize * ksize * C)
    return patches, Ho, Wo


def downsample_layer(x, weight, bias, gamma, beta, *, tile_m=None,
                     matmul_dtype=jnp.float32, out_layout="NCHW"):
    """x: (N, Cin, H, W) f32; weight: (Cout, Cin, 3, 3); bias/gamma/beta: (Cout,)."""
    del bias  # conv bias cancels exactly under train-mode BatchNorm mean subtraction
    N, Cin, H, W = x.shape
    Cout = weight.shape[0]
    ksize, stride = 3, 2

    patches, Ho, Wo = _im2col_nhwc(x, ksize, stride)        # (M, K), K-order (kh, kw, c)
    M = N * Ho * Wo
    K = Cin * ksize * ksize

    K_pad = _round_up(K, 8)            # sublane-aligned contraction dim
    C_pad = _round_up(Cout, 128)       # lane-dense output channels

    vmem_budget = _vmem_budget_bytes()
    if tile_m is None:
        tile_m = 1024 if vmem_budget > (64 << 20) else 512
    m_pad8 = _round_up(M, 8)
    if m_pad8 <= tile_m:
        tile_m = m_pad8
        M_pad = m_pad8
    else:
        M_pad = _round_up(M, tile_m)
    grid_m = M_pad // tile_m

    # zero-pad: zero rows/cols contribute nothing to the matmul or to sum/sumsq.
    patches = jnp.pad(patches, ((0, M_pad - M), (0, K_pad - K))).astype(matmul_dtype)
    # (Cout, Cin, 3, 3) OIHW -> (3, 3, Cin, Cout) -> (K, Cout), matching patch K-order (kh, kw, c)
    w2d = weight.transpose(2, 3, 1, 0).reshape(K, Cout)
    w2d = jnp.pad(w2d, ((0, K_pad - K), (0, C_pad - Cout))).astype(matmul_dtype)

    bpe = 4
    cost1 = pl.CostEstimate(
        flops=2 * M_pad * K_pad * C_pad + 3 * M_pad * C_pad,
        transcendentals=0,
        bytes_accessed=bpe * (M_pad * K_pad + K_pad * C_pad + M_pad * C_pad + 2 * C_pad))

    conv, csum, csumsq = pl.pallas_call(
        _conv_stats_kernel,
        out_shape=(jax.ShapeDtypeStruct((M_pad, C_pad), jnp.float32),
                   jax.ShapeDtypeStruct((1, C_pad), jnp.float32),
                   jax.ShapeDtypeStruct((1, C_pad), jnp.float32)),
        grid=(grid_m,),
        in_specs=[pl.BlockSpec((tile_m, K_pad), lambda i: (i, 0)),
                  pl.BlockSpec((K_pad, C_pad), lambda i: (0, 0))],
        out_specs=(pl.BlockSpec((tile_m, C_pad), lambda i: (i, 0)),
                   pl.BlockSpec((1, C_pad), lambda i: (0, 0)),     # resident accumulators
                   pl.BlockSpec((1, C_pad), lambda i: (0, 0))),
        compiler_params=pltpu.CompilerParams(
            dimension_semantics=("arbitrary",),
            vmem_limit_bytes=vmem_budget),
        cost_estimate=cost1,
    )(patches, w2d)

    # Fold BN into per-channel scale/shift (tiny (1, C_pad) math).
    # Padded rows/channels contributed exactly zero, so divide by the true M.
    # NOTE: single-pass E[x^2]-E[x]^2 in fp32; clamp guards tiny negative rounding.
    mean = csum / M
    var = jnp.maximum(csumsq / M - mean * mean, 0.0)
    inv_std = jax.lax.rsqrt(var + EPS)
    gamma_p = jnp.pad(gamma, (0, C_pad - Cout)).reshape(1, C_pad).astype(jnp.float32)
    beta_p = jnp.pad(beta, (0, C_pad - Cout)).reshape(1, C_pad).astype(jnp.float32)
    scale = gamma_p * inv_std
    shift = beta_p - mean * scale

    cost2 = pl.CostEstimate(
        flops=4 * M_pad * C_pad, transcendentals=0,
        bytes_accessed=bpe * (2 * M_pad * C_pad + 2 * C_pad))

    out_pad = pl.pallas_call(
        _bn_lrelu_kernel,
        out_shape=jax.ShapeDtypeStruct((M_pad, C_pad), jnp.float32),
        grid=(grid_m,),
        in_specs=[pl.BlockSpec((tile_m, C_pad), lambda i: (i, 0)),
                  pl.BlockSpec((1, C_pad), lambda i: (0, 0)),
                  pl.BlockSpec((1, C_pad), lambda i: (0, 0))],
        out_specs=pl.BlockSpec((tile_m, C_pad), lambda i: (i, 0)),
        compiler_params=pltpu.CompilerParams(
            dimension_semantics=("parallel",),        # shards across v7x's 2 TensorCores
            vmem_limit_bytes=vmem_budget),
        cost_estimate=cost2,
    )(conv, scale, shift)

    out_nhwc = out_pad[:M, :Cout].reshape(N, Ho, Wo, Cout)
    if out_layout == "NHWC":
        return out_nhwc                               # lane-friendly; preferred for fused consumers
    return out_nhwc.transpose(0, 3, 1, 2)             # NCHW to match the PyTorch module


def _reference(x, weight, bias, gamma, beta):
    conv = jax.lax.conv_general_dilated(
        x, weight, window_strides=(2, 2), padding="VALID",
        dimension_numbers=("NCHW", "OIHW", "NCHW")) + bias[None, :, None, None]
    mean = conv.mean(axis=(0, 2, 3), keepdims=True)
    var = ((conv - mean) ** 2).mean(axis=(0, 2, 3), keepdims=True)
    y = (conv - mean) * jax.lax.rsqrt(var + EPS)
    y = y * gamma[None, :, None, None] + beta[None, :, None, None]
    return jnp.where(y > 0, y, NEG_SLOPE * y)


if __name__ == "__main__":
    key = jax.random.PRNGKey(0)
    N, Cin, Cout, H, W = 2, 4, 8, 16, 16

    kx, kw, kb = jax.random.split(key, 3)
    x = jax.random.normal(kx, (N, Cin, H, W), dtype=jnp.float32)
    weight = jax.random.normal(kw, (Cout, Cin, 3, 3), dtype=jnp.float32) * 0.1
    bias = jax.random.normal(kb, (Cout,), dtype=jnp.float32) * 0.1
    gamma = jnp.ones((Cout,), dtype=jnp.float32)   # BatchNorm2d weight init
    beta = jnp.zeros((Cout,), dtype=jnp.float32)   # BatchNorm2d bias init

    out = downsample_layer(x, weight, bias, gamma, beta)
    jax.block_until_ready(out)

    ref = _reference(x, weight, bias, gamma, beta)
    assert out.shape == (N, Cout, (H - 3) // 2 + 1, (W - 3) // 2 + 1)
    assert jnp.allclose(out, ref, atol=1e-4, rtol=1e-4)

    print("KERNEL_OK")
</pallas_src>

<mosaic_0001>
module attributes {stable_mosaic.version = 11 : i64} {
  func.func @_conv_stats_kernel(%arg0: i32, %arg1: memref<104x40xf32, #tpu.memory_space<vmem>>, %arg2: memref<40x128xf32, #tpu.memory_space<vmem>>, %arg3: memref<104x128xf32, #tpu.memory_space<vmem>>, %arg4: memref<1x128xf32, #tpu.memory_space<vmem>>, %arg5: memref<1x128xf32, #tpu.memory_space<vmem>>) attributes {dimension_semantics = [#tpu.dimension_semantics<arbitrary>], iteration_bounds = array<i64: 1>, scalar_prefetch = 0 : i64, scratch_operands = 0 : i64, tpu.core_type = #tpu.core_type<tc>, window_params = [{transform_indices = @transform_0, window_bounds = array<i64: 104, 40>}, {pipeline_mode = #tpu.pipeline_mode<synchronous>, transform_indices = @transform_1, window_bounds = array<i64: 40, 128>}, {transform_indices = @transform_2, window_bounds = array<i64: 104, 128>}, {pipeline_mode = #tpu.pipeline_mode<synchronous>, transform_indices = @transform_3, window_bounds = array<i64: 1, 128>}, {pipeline_mode = #tpu.pipeline_mode<synchronous>, transform_indices = @transform_4, window_bounds = array<i64: 1, 128>}]} {
    %c0_i32 = arith.constant 0 : i32
    %0 = arith.cmpi eq, %arg0, %c0_i32 : i32
    %1 = arith.extui %0 : i1 to i32
    %c0_i32_0 = arith.constant 0 : i32
    %2 = arith.cmpi ne, %1, %c0_i32_0 : i32
    scf.if %2 {
      %cst_16 = arith.constant 0.000000e+00 : f32
      %18 = vector.broadcast %cst_16 : f32 to vector<1x128xf32>
      %c0_17 = arith.constant 0 : index
      %c0_18 = arith.constant 0 : index
      %19 = vector.load %arg4[%c0_17, %c0_18] : memref<1x128xf32, #tpu.memory_space<vmem>>, vector<1x128xf32>
      tpu.vector_store %arg4[%c0_17, %c0_18], %18 {strides = array<i32>} : memref<1x128xf32, #tpu.memory_space<vmem>>, vector<1x128xf32>,
      %cst_19 = arith.constant 0.000000e+00 : f32
      %20 = vector.broadcast %cst_19 : f32 to vector<1x128xf32>
      %c0_20 = arith.constant 0 : index
      %c0_21 = arith.constant 0 : index
      %21 = vector.load %arg5[%c0_20, %c0_21] : memref<1x128xf32, #tpu.memory_space<vmem>>, vector<1x128xf32>
      tpu.vector_store %arg5[%c0_20, %c0_21], %20 {strides = array<i32>} : memref<1x128xf32, #tpu.memory_space<vmem>>, vector<1x128xf32>,
    } else {
    }
    %c0 = arith.constant 0 : index
    %c0_1 = arith.constant 0 : index
    %3 = vector.load %arg1[%c0, %c0_1] : memref<104x40xf32, #tpu.memory_space<vmem>>, vector<104x40xf32>
    %c0_2 = arith.constant 0 : index
    %c0_3 = arith.constant 0 : index
    %4 = vector.load %arg2[%c0_2, %c0_3] : memref<40x128xf32, #tpu.memory_space<vmem>>, vector<40x128xf32>
    %cst = arith.constant dense<0.000000e+00> : vector<104x128xf32>
    %5 = tpu.matmul %3, %4, %cst {dimension_numbers = #tpu.dot_dimension_numbers<[1], [0], [0], [1], [0, 0, 1, 1], [], []>} : vector<104x40xf32>, vector<40x128xf32>, vector<104x128xf32> -> vector<104x128xf32>
    %c0_4 = arith.constant 0 : index
    %c0_5 = arith.constant 0 : index
    %6 = vector.load %arg3[%c0_4, %c0_5] : memref<104x128xf32, #tpu.memory_space<vmem>>, vector<104x128xf32>
    tpu.vector_store %arg3[%c0_4, %c0_5], %5 {strides = array<i32>} : memref<104x128xf32, #tpu.memory_space<vmem>>, vector<104x128xf32>,
    %c0_6 = arith.constant 0 : index
    %c0_7 = arith.constant 0 : index
    %7 = vector.load %arg4[%c0_6, %c0_7] : memref<1x128xf32, #tpu.memory_space<vmem>>, vector<1x128xf32>
    %cst_8 = arith.constant dense<0.000000e+00> : vector<128xf32>
    %8 = vector.multi_reduction <add>, %5, %cst_8 [0] : vector<104x128xf32> to vector<128xf32>
    %9 = vector.shape_cast %8 : vector<128xf32> to vector<1x128xf32>
    %10 = arith.addf %7, %9 : vector<1x128xf32>
    %c0_9 = arith.constant 0 : index
    %c0_10 = arith.constant 0 : index
    %11 = vector.load %arg4[%c0_9, %c0_10] : memref<1x128xf32, #tpu.memory_space<vmem>>, vector<1x128xf32>
    tpu.vector_store %arg4[%c0_9, %c0_10], %10 {strides = array<i32>} : memref<1x128xf32, #tpu.memory_space<vmem>>, vector<1x128xf32>,
    %c0_11 = arith.constant 0 : index
    %c0_12 = arith.constant 0 : index
    %12 = vector.load %arg5[%c0_11, %c0_12] : memref<1x128xf32, #tpu.memory_space<vmem>>, vector<1x128xf32>
    %13 = arith.mulf %5, %5 : vector<104x128xf32>
    %cst_13 = arith.constant dense<0.000000e+00> : vector<128xf32>
    %14 = vector.multi_reduction <add>, %13, %cst_13 [0] : vector<104x128xf32> to vector<128xf32>
    %15 = vector.shape_cast %14 : vector<128xf32> to vector<1x128xf32>
    %16 = arith.addf %12, %15 : vector<1x128xf32>
    %c0_14 = arith.constant 0 : index
    %c0_15 = arith.constant 0 : index
    %17 = vector.load %arg5[%c0_14, %c0_15] : memref<1x128xf32, #tpu.memory_space<vmem>>, vector<1x128xf32>
    tpu.vector_store %arg5[%c0_14, %c0_15], %16 {strides = array<i32>} : memref<1x128xf32, #tpu.memory_space<vmem>>, vector<1x128xf32>,
    return
  }
  func.func @transform_0(%arg0: i32) -> (i32, i32) {
    %c0_i32 = arith.constant 0 : i32
    %c0_i32_0 = arith.constant 0 : i32
    return %arg0, %c0_i32 : i32, i32
  }
  func.func @transform_1(%arg0: i32) -> (i32, i32) {
    %c0_i32 = arith.constant 0 : i32
    %c0_i32_0 = arith.constant 0 : i32
    %c0_i32_1 = arith.constant 0 : i32
    return %c0_i32, %c0_i32_0 : i32, i32
  }
  func.func @transform_2(%arg0: i32) -> (i32, i32) {
    %c0_i32 = arith.constant 0 : i32
    %c0_i32_0 = arith.constant 0 : i32
    return %arg0, %c0_i32 : i32, i32
  }
  func.func @transform_3(%arg0: i32) -> (i32, i32) {
    %c0_i32 = arith.constant 0 : i32
    %c0_i32_0 = arith.constant 0 : i32
    %c0_i32_1 = arith.constant 0 : i32
    return %c0_i32, %c0_i32_0 : i32, i32
  }
  func.func @transform_4(%arg0: i32) -> (i32, i32) {
    %c0_i32 = arith.constant 0 : i32
    %c0_i32_0 = arith.constant 0 : i32
    %c0_i32_1 = arith.constant 0 : i32
    return %c0_i32, %c0_i32_0 : i32, i32
  }
}

</mosaic_0001>

<bundles_post_ra>
// kernel: tpu_custom_call.1
= control target key start
LH: loop header
LB: loop body
LE: loop exit
PB: predicated region body
PF: predicated region fallthrough
CT: control target
= control target key end

     0   :  { %10 = vsyncpa [#allocation3], 0  ;;  %s470_s0 = inlined_call_operand.vmem [shape: f32[104,40], index: 0, kind: input, shape index: {}]   ;;  %s471_s1 = inlined_call_operand.vmem [shape: f32[40,128], index: 1, kind: input, shape index: {}]   ;;  %s472_s2 = inlined_call_operand.hbm [shape: f32[104,128], index: 2, kind: output, shape index: {0}]   ;;  %s473_s3 = inlined_call_operand.hbm [shape: f32[1,128], index: 3, kind: output, shape index: {1}]   ;;  %s474_s4 = inlined_call_operand.hbm [shape: f32[1,128], index: 4, kind: output, shape index: {2}]  }
   0x1   :  { %v39_v0 = vld [vmem:[%s471_s1 + $0x20] sm:$0xff]  ;;  %v38_v1 = vld [vmem:[%s471_s1 + $0x18] sm:$0xff]  ;;  %v37_v2 = vld [vmem:[%s471_s1 + $0x10] sm:$0xff] }
   0x2   :  { %91 = vmatpush.msra.mxu0 %v39_v0  ;;  %267 = vmatpush.msra.mxu2 %v39_v0  ;;  %v36_v3 = vld [vmem:[%s471_s1 + $0x8] sm:$0xff]  ;;  %v35_v4 = vld [vmem:[%s471_s1] sm:$0xff] }
   0x3   :  { %266 = vmatpush.msra.mxu1 %v39_v0  ;;  %268 = vmatpush.msra.mxu3 %v39_v0 }
   0x4   :  { %92 = vmatpush.msra.mxu0 %v38_v1  ;;  %270 = vmatpush.msra.mxu2 %v38_v1 }
   0x5   :  { %269 = vmatpush.msra.mxu1 %v38_v1  ;;  %271 = vmatpush.msra.mxu3 %v38_v1 }
   0x6   :  { %93 = vmatpush.msra.mxu0 %v37_v2  ;;  %273 = vmatpush.msra.mxu2 %v37_v2 }
   0x7   :  { %272 = vmatpush.msra.mxu1 %v37_v2  ;;  %274 = vmatpush.msra.mxu3 %v37_v2 }
   0x8   :  { %11 = vsyncpa [#allocation5], 0  ;;  %94 = vmatpush.msra.mxu0 %v36_v3  ;;  %276 = vmatpush.msra.mxu2 %v36_v3  ;;  %v22_v5 = vld [vmem:[%s470_s0] sm:$0xff]  ;;  %vm40_vm0 = vcmask 326656   ;;  %v28_v6 = vld [vmem:[%s470_s0 + $0x30] sm:$0xff]  ;;  %v363_v24 = vmov 0.0  }
   0x9   :  { %275 = vmatpush.msra.mxu1 %v36_v3  ;;  %277 = vmatpush.msra.mxu3 %v36_v3  ;;  %v25_v7 = vld [vmem:[%s470_s0 + $0x18] sm:$0xff]  ;;  %v32_v8 = vld [vmem:[%s470_s0 + $0x50] sm:$0xff]  ;;  %v23_v9 = vld [vmem:[%s470_s0 + $0x8] sm:$0xff]  ;;  %20 = vst [vmem:[#allocation4] sm:$0x1] %v363_v24  ;;  %s210_s27 = sshll.u32 %s472_s2, 4  ;;  %s211_s27 = int_to_ptr.hbm [resolvable:$true] %s210_s27 }
   0xa   :  { %95 = vmatpush.msra.mxu0 %v35_v4  ;;  %279 = vmatpush.msra.mxu2 %v35_v4  ;;  %v29_v10 = vld [vmem:[%s470_s0 + $0x38] sm:$0xff]  ;;  %v26_v11 = vld [vmem:[%s470_s0 + $0x20] sm:$0xff]  ;;  %v24_v13 = vld [vmem:[%s470_s0 + $0x10] sm:$0xff]  ;;  %21 = vst [vmem:[#allocation6] sm:$0x1] %v363_v24  ;;  %s365_s28 = smov 128  }
   0xb   :  { %253 = vmatmul.msk.f32.vlgmr.msra.gmra.mxu0 %vm40_vm0, %v22_v5  ;;  %259 = vmatmul.msk.f32.vlgmr.msra.gmra.mxu2 %vm40_vm0, %v28_v6  ;;  %v33_v12 = vld [vmem:[%s470_s0 + $0x58] sm:$0xff]  ;;  %v30_v14 = vld [vmem:[%s470_s0 + $0x40] sm:$0xff]  ;;  %v27_v15 = vld [vmem:[%s470_s0 + $0x28] sm:$0xff]  ;;  %s366_s29 = smov 8   ;;  %s367_s2 = smov [#allocation4]  }
   0xc   :  { %278 = vmatpush.msra.mxu1 %v35_v4  ;;  %280 = vmatpush.msra.mxu3 %v35_v4  ;;  %v34_v16 = vld [vmem:[%s470_s0 + $0x60] sm:$0xff]  ;;  %v31_v17 = vld [vmem:[%s470_s0 + $0x48] sm:$0xff]  ;;  %s364_s0 = smov [#allocation2]   ;;  %s222_s1 = sshll.u32 %s367_s2, 4  ;;  %s223_s1 = int_to_ptr.vmem [resolvable:$true] %s222_s1 }
   0xd   :  { %256 = vmatmul.msk.f32.vlgmr.msra.gmra.mxu1 %vm40_vm0, %v25_v7  ;;  %263 = vmatmul.msk.f32.vlgmr.msra.gmra.mxu3 %vm40_vm0, %v32_v8  ;;  %s208_s24 = sshll.u32 %s364_s0, 4  ;;  %s224_s6 = sshll.u32 %s473_s3, 4  ;;  %s209_s24 = int_to_ptr.vmem [resolvable:$true] %s208_s24  ;;  %s225_s6 = int_to_ptr.hbm [resolvable:$true] %s224_s6 }
   0xe   :  { %s368_s7 = smov [#allocation6]   ;;  %s235_s11 = sshll.u32 %s474_s4, 4  ;;  %s236_s11 = int_to_ptr.hbm [resolvable:$true] %s235_s11 }
   0xf   :  { %s233_s8 = sshll.u32 %s368_s7, 4  ;;  %s234_s8 = int_to_ptr.vmem [resolvable:$true] %s233_s8 }
  0x13   :  { %254 = vmatmul.msk.f32.gmra.mxu0 %vm40_vm0, %v23_v9  ;;  %260 = vmatmul.msk.f32.gmra.mxu2 %vm40_vm0, %v29_v10 }
  0x15   :  { %257 = vmatmul.msk.f32.gmra.mxu1 %vm40_vm0, %v26_v11  ;;  %264 = vmatmul.msk.f32.gmra.mxu3 %vm40_vm0, %v33_v12 }
  0x1b   :  { %255 = vmatmul.msk.f32.gmra.mxu0 %vm40_vm0, %v24_v13  ;;  %261 = vmatmul.msk.f32.gmra.mxu2 %vm40_vm0, %v30_v14  ;;  %v149_v14 = vld [vmem:[#allocation4] sm:$0x1] }
  0x1d   :  { %258 = vmatmul.msk.f32.gmra.mxu1 %vm40_vm0, %v27_v15  ;;  %265 = vmatmul.msk.f32.gmra.mxu3 %vm40_vm0, %v34_v16 }
  0x23   :  { %262 = vmatmul.msk.f32.gmra.mxu2 %vm40_vm0, %v31_v17  ;;  %v170_v17 = vld [vmem:[#allocation6] sm:$0x1] }
  0x88   :  { %v97_v18 = vpop.f32.mrf.mxu0 }
  0x89   :  { %136 = vst [vmem:[#allocation2] sm:$0xff] %v97_v18  ;;  %v171_v27 = vmul.f32 %v97_v18, %v97_v18 }
  0x8a   :  { %v106_v19 = vpop.f32.mrf.mxu1 }
  0x8b   :  { %139 = vst [vmem:[#allocation2 + $0x18] sm:$0xff] %v106_v19  ;;  %v174_v35 = vmul.f32 %v106_v19, %v106_v19 }
  0x8e   :  { %v115_v20 = vpop.f32.mrf.mxu2 }
  0x8f   :  { %142 = vst [vmem:[#allocation2 + $0x30] sm:$0xff] %v115_v20  ;;  %v177_v46 = vmul.f32 %v115_v20, %v115_v20 }
  0x90   :  { %v100_v21 = vpop.f32.mrf.mxu0  ;;  %v127_v22 = vpop.f32.mrf.mxu3 }
  0x91   :  { %137 = vst [vmem:[#allocation2 + $0x8] sm:$0xff] %v100_v21  ;;  %v172_v25 = vmul.f32 %v100_v21, %v100_v21  ;;  %v150_v28 = vadd.f32 %v100_v21, %v97_v18  ;;  %v181_v59 = vmul.f32 %v127_v22, %v127_v22 }
  0x92   :  { %v109_v23 = vpop.f32.mrf.mxu1  ;;  %146 = vst [vmem:[#allocation2 + $0x50] sm:$0xff] %v127_v22 }
  0x93   :  { %140 = vst [vmem:[#allocation2 + $0x20] sm:$0xff] %v109_v23  ;;  %v184_v31 = vadd.f32 %v172_v25, %v171_v27  ;;  %v175_v38 = vmul.f32 %v109_v23, %v109_v23 }
  0x96   :  { %v118_v26 = vpop.f32.mrf.mxu2 }
  0x97   :  { %143 = vst [vmem:[#allocation2 + $0x38] sm:$0xff] %v118_v26  ;;  %v178_v49 = vmul.f32 %v118_v26, %v118_v26 }
  0x98   :  { %v103_v29 = vpop.f32.mrf.mxu0  ;;  %v130_v30 = vpop.f32.mrf.mxu3 }
  0x99   :  { %138 = vst [vmem:[#allocation2 + $0x10] sm:$0xff] %v103_v29  ;;  %v151_v32 = vadd.f32 %v150_v28, %v103_v29  ;;  %v173_v33 = vmul.f32 %v103_v29, %v103_v29  ;;  %v182_v62 = vmul.f32 %v130_v30, %v130_v30 }
  0x9a   :  { %v112_v34 = vpop.f32.mrf.mxu1  ;;  %147 = vst [vmem:[#allocation2 + $0x58] sm:$0xff] %v130_v30 }
  0x9b   :  { %v152_v36 = vadd.f32 %v151_v32, %v106_v19  ;;  %v185_v37 = vadd.f32 %v184_v31, %v173_v33  ;;  %141 = vst [vmem:[#allocation2 + $0x28] sm:$0xff] %v112_v34  ;;  %v176_v41 = vmul.f32 %v112_v34, %v112_v34 }
  0x9d   :  { %v186_v39 = vadd.f32 %v185_v37, %v174_v35  ;;  %v153_v40 = vadd.f32 %v152_v36, %v109_v23 }
  0x9e   :  { %v121_v42 = vpop.f32.mrf.mxu2 }
  0x9f   :  { %v154_v43 = vadd.f32 %v153_v40, %v112_v34  ;;  %v187_v44 = vadd.f32 %v186_v39, %v175_v38  ;;  %144 = vst [vmem:[#allocation2 + $0x40] sm:$0xff] %v121_v42  ;;  %v179_v53 = vmul.f32 %v121_v42, %v121_v42 }
  0xa0   :  { %v133_v45 = vpop.f32.mrf.mxu3 }
  0xa1   :  { %v155_v47 = vadd.f32 %v154_v43, %v115_v20  ;;  %v188_v48 = vadd.f32 %v187_v44, %v176_v41  ;;  %148 = vst [vmem:[#allocation2 + $0x60] sm:$0xff] %v133_v45  ;;  %v183_v1 = vmul.f32 %v133_v45, %v133_v45 }
  0xa3   :  { %v189_v50 = vadd.f32 %v188_v48, %v177_v46  ;;  %v156_v51 = vadd.f32 %v155_v47, %v118_v26 }
  0xa5   :  { %v157_v52 = vadd.f32 %v156_v51, %v121_v42  ;;  %v190_v54 = vadd.f32 %v189_v50, %v178_v49 }
  0xa6   :  { %v124_v55 = vpop.f32.mrf.mxu2 }
  0xa7   :  { %v191_v56 = vadd.f32 %v190_v54, %v179_v53  ;;  %145 = vst [vmem:[#allocation2 + $0x48] sm:$0xff] %v124_v55  ;;  %v158_v57 = vadd.f32 %v157_v52, %v124_v55  ;;  %v180_v58 = vmul.f32 %v124_v55, %v124_v55 }
  0xa8   :  { %216 = dma.vmem_to_hbm [thread:$0]  %s209_s24, 1664, %s211_s27, [#allocation3], %s365_s28, %s365_s28, %s366_s29  }
  0xa9   :  { %v159_v60 = vadd.f32 %v158_v57, %v127_v22  ;;  %v192_v61 = vadd.f32 %v191_v56, %v180_v58 }
  0xab   :  { %v193_v63 = vadd.f32 %v192_v61, %v181_v59  ;;  %v160_v0 = vadd.f32 %v159_v60, %v130_v30 }
  0xad   :  { %v161_v2 = vadd.f32 %v160_v0, %v133_v45  ;;  %v194_v3 = vadd.f32 %v193_v63, %v182_v62 }
  0xaf   :  { %v162_v4 = vrot.slane %v161_v2, 4  ;;  %v195_v5 = vadd.f32 %v194_v3, %v183_v1 }
  0xb1   :  { %v163_v6 = vadd.f32 %v162_v4, %v161_v2  ;;  %v196_v7 = vrot.slane %v195_v5, 4 }
  0xb3   :  { %v164_v8 = vrot.slane %v163_v6, 2  ;;  %v197_v9 = vadd.f32 %v196_v7, %v195_v5 }
  0xb5   :  { %v165_v10 = vadd.f32 %v164_v8, %v163_v6  ;;  %v198_v11 = vrot.slane %v197_v9, 2 }
  0xb7   :  { %v166_v12 = vrot.slane %v165_v10, 1  ;;  %v199_v13 = vadd.f32 %v198_v11, %v197_v9 }
  0xb9   :  { %v167_v15 = vadd.f32 %v166_v12, %v165_v10  ;;  %v200_v16 = vrot.slane %v199_v13, 1 }
  0xbb   :  { %v168_v18 = vadd.f32 %v167_v15, %v149_v14  ;;  %v201_v19 = vadd.f32 %v200_v16, %v199_v13 }
  0xbd   :  { %169 = vst [vmem:[#allocation4] sm:$0x1] %v168_v18  ;;  %v202_v20 = vadd.f32 %v201_v19, %v170_v17 }
  0xbe   :  { %227 = dma.vmem_to_hbm [thread:$0]  %s223_s1, 16, %s225_s6, [#allocation5]  }
  0xbf   :  { %203 = vst [vmem:[#allocation6] sm:$0x1] %v202_v20 }
  0xc0   :  { %238 = dma.vmem_to_hbm [thread:$0]  %s234_s8, 16, %s236_s11, [#allocation5]  }
  0xc1   :  { %359 = dma.done.wait [#allocation3], 1664  }
  0xc2   :  { %360 = vsyncadd [#allocation3], 4294965632 }
  0xc3   :  { %361 = dma.done.wait [#allocation5], 32  }
  0xc4   :  { %362 = vsyncadd [#allocation5], 4294967264 }
  0xc5   :  { %251 = vsyncpa [#allocation3], 1 }
  0xc6   :  { %252 = vsyncpa [#allocation5], 1 }

</bundles_post_ra>
